<compile_context>
chip_gen: v5e
topology: v5e:2x2
jax: 0.10.0
libtpu: 0.0.40
codegen_flags: <defaults>
</compile_context>

<pallas_src>
import jax
import jax.numpy as jnp
from jax.experimental import pallas as pl
from jax.experimental.pallas import tpu as pltpu

LANE = 128


def graphgnn_kernel(src_ref, dst_ref, x_ref, w1_ref, b1_ref, w2_ref, b2_ref, o_ref):
    """Whole (flattened) batch in a single invocation.

    src_ref : (1, BE)   int32  edge sources, already offset by graph*N
    dst_ref : (1, BE)   int32  edge destinations, already offset by graph*N
    x_ref   : (BN, F)   bf16   node features (all graphs stacked)
    w1_ref  : (2F, H)   bf16   [W1_rel ; W1_root] stacked on the contraction axis
    b1_ref  : (1, H)    f32
    w2_ref  : (2H, Op)  bf16   [W2_rel ; W2_root], out padded to lane width
    b2_ref  : (1, Op)   f32
    o_ref   : (BN, Op)  f32    lane-dense output (Op = out padded to 128)
    """
    bn = x_ref.shape[0]
    be = src_ref.shape[1]

    # ---- block-diagonal dense adjacency built in-kernel from edge_index ----
    # A[i, j] = #{edges k : dst[k] == i and src[k] == j}  (duplicate edges add up)
    src = src_ref[...]                                            # (1, BE)
    dst = dst_ref[...]                                            # (1, BE)
    node_ids = jax.lax.broadcasted_iota(jnp.int32, (bn, be), 0)   # (BN, BE)
    dst_oh = jnp.where(node_ids == dst, 1.0, 0.0).astype(jnp.bfloat16)   # (BN, BE)
    src_oh = jnp.where(node_ids == src, 1.0, 0.0).astype(jnp.bfloat16)   # (BN, BE)
    adj = jax.lax.dot_general(                                    # (BN, BN) exact counts
        dst_oh, src_oh, (((1,), (1,)), ((), ())),
        preferred_element_type=jnp.float32).astype(jnp.bfloat16)

    x = x_ref[...]                                                # (BN, F) bf16

    # ---- layer 1: GraphConv(in, hidden) + ReLU (fused rel/root matmul) ----
    agg1 = jnp.dot(adj, x, preferred_element_type=jnp.float32).astype(jnp.bfloat16)
    z1 = jnp.concatenate([agg1, x], axis=1)                       # (BN, 2F) bf16
    h1 = jnp.dot(z1, w1_ref[...], preferred_element_type=jnp.float32) + b1_ref[...]
    h1 = jnp.maximum(h1, 0.0).astype(jnp.bfloat16)                # (BN, H)

    # ---- layer 2: GraphConv(hidden, out) + ReLU ----
    agg2 = jnp.dot(adj, h1, preferred_element_type=jnp.float32).astype(jnp.bfloat16)
    z2 = jnp.concatenate([agg2, h1], axis=1)                      # (BN, 2H) bf16
    h2 = jnp.dot(z2, w2_ref[...], preferred_element_type=jnp.float32) + b2_ref[...]
    o_ref[...] = jnp.maximum(h2, 0.0)                             # unmasked lane-dense store


def _pad_lanes(a, width):
    pad = width - a.shape[-1]
    return a if pad == 0 else jnp.pad(a, ((0, 0), (0, pad)))


@jax.jit
def graphgnn_forward_batched(x, edge_index, params):
    """x: (B, N, F) float; edge_index: (B, 2, E) int [src; dst]. -> (B, N, out) f32."""
    B, N, F_in = x.shape
    E = edge_index.shape[-1]
    H = params["w1_rel"].shape[1]
    O = params["w2_rel"].shape[1]

    o_pad = pl.cdiv(O, LANE) * LANE
    BN, BE = B * N, B * E

    # Flatten graphs: node ids of graph b live in [b*N, (b+1)*N), so the dense
    # adjacency built in-kernel is block-diagonal (no cross-graph edges).
    offs = (jnp.arange(B, dtype=jnp.int32) * N)[:, None, None]          # (B,1,1)
    ei = edge_index.astype(jnp.int32) + offs                            # (B,2,E)
    src = ei[:, 0, :].reshape(1, BE)
    dst = ei[:, 1, :].reshape(1, BE)
    x_flat = x.reshape(BN, F_in).astype(jnp.bfloat16)

    # Fused [rel; root] weights (stacked on the contraction axis), bf16 on the
    # MXU; biases stay f32 and are added to the f32 accumulators in-kernel.
    w1 = jnp.concatenate([params["w1_rel"], params["w1_root"]], axis=0).astype(jnp.bfloat16)
    w2 = _pad_lanes(jnp.concatenate([params["w2_rel"], params["w2_root"]], axis=0),
                    o_pad).astype(jnp.bfloat16)
    b1 = params["b1"].astype(jnp.float32)
    b2 = _pad_lanes(params["b2"], o_pad).astype(jnp.float32)

    vmem = pl.BlockSpec(memory_space=pltpu.MemorySpace.VMEM)
    out = pl.pallas_call(
        graphgnn_kernel,
        out_shape=jax.ShapeDtypeStruct((BN, o_pad), jnp.float32),
        in_specs=[vmem] * 7,
        out_specs=vmem,
    )(src, dst, x_flat, w1, b1, w2, b2)

    return out[:, :O].reshape(B, N, O)


def graphgnn_forward(x, edge_index, params, dropout=False):
    """Single-graph forward matching Graphgnn.forward(x, edge_index, dropout);
    dropout is unused in the multi_gnn=False branch."""
    del dropout
    return graphgnn_forward_batched(x[None], edge_index[None], params)[0]


def init_params(key, in_channels, hidden_channels, out_channels):
    """Weights stored as (in, out) so the kernel does x @ W (== PyTorch x @ W.T)."""
    # The PyTorch module applies GraphConv(in_channels, out_channels) to a
    # hidden_channels-wide tensor; only shape-valid when in == hidden.
    assert in_channels == hidden_channels, "Graphgnn requires in_channels == hidden_channels"
    ks = jax.random.split(key, 6)
    scale1 = 1.0 / jnp.sqrt(in_channels)
    scale2 = 1.0 / jnp.sqrt(hidden_channels)
    return {
        # conv1: GraphConv(in_channels, hidden_channels)
        "w1_rel":  jax.random.uniform(ks[0], (in_channels, hidden_channels),
                                      jnp.float32, -scale1, scale1),
        "w1_root": jax.random.uniform(ks[1], (in_channels, hidden_channels),
                                      jnp.float32, -scale1, scale1),
        "b1":      jax.random.uniform(ks[2], (1, hidden_channels),
                                      jnp.float32, -scale1, scale1),
        # conv2: GraphConv(hidden_channels, out_channels)
        "w2_rel":  jax.random.uniform(ks[3], (hidden_channels, out_channels),
                                      jnp.float32, -scale2, scale2),
        "w2_root": jax.random.uniform(ks[4], (hidden_channels, out_channels),
                                      jnp.float32, -scale2, scale2),
        "b2":      jax.random.uniform(ks[5], (1, out_channels),
                                      jnp.float32, -scale2, scale2),
    }


if __name__ == "__main__":
    key = jax.random.PRNGKey(0)
    k_x, k_e, k_p = jax.random.split(key, 3)

    B, N = 4, 8                    # 4 graphs of 8 nodes (e.g. agents) per call
    in_channels = hidden_channels = out_channels = 32
    E = 16                         # edges per graph

    x = jax.random.normal(k_x, (B, N, in_channels), jnp.float32)
    # Arbitrary per-graph topology (may contain duplicates / self loops).
    edge_index = jax.random.randint(k_e, (B, 2, E), 0, N, dtype=jnp.int32)

    params = init_params(k_p, in_channels, hidden_channels, out_channels)

    out = graphgnn_forward_batched(x, edge_index, params)
    jax.block_until_ready(out)
    assert out.shape == (B, N, out_channels)

    # Pure-JAX reference with the same bf16 rounding points / f32 accumulation.
    def bround(a):
        return a.astype(jnp.bfloat16).astype(jnp.float32)

    w1r, w1s = bround(params["w1_rel"]), bround(params["w1_root"])
    w2r, w2s = bround(params["w2_rel"]), bround(params["w2_root"])
    b1, b2 = params["b1"], params["b2"]
    refs = []
    for b in range(B):
        adj = jnp.zeros((N, N), jnp.float32).at[edge_index[b, 1], edge_index[b, 0]].add(1.0)
        xb = bround(x[b])
        h1 = jnp.maximum(bround(adj @ xb) @ w1r + xb @ w1s + b1, 0.0)
        h1 = bround(h1)
        h2 = jnp.maximum(bround(adj @ h1) @ w2r + h1 @ w2s + b2, 0.0)
        refs.append(h2)
    ref = jnp.stack(refs)

    assert jnp.allclose(out, ref, atol=2e-2, rtol=2e-2), \
        float(jnp.max(jnp.abs(out - ref)))

    print("KERNEL_OK")
</pallas_src>

<mosaic_0001>
module attributes {stable_mosaic.version = 11 : i64} {
  func.func @graphgnn_kernel(%arg0: memref<1x64xi32, #tpu.memory_space<vmem>>, %arg1: memref<1x64xi32, #tpu.memory_space<vmem>>, %arg2: memref<32x32xbf16, #tpu.memory_space<vmem>>, %arg3: memref<64x32xbf16, #tpu.memory_space<vmem>>, %arg4: memref<1x32xf32, #tpu.memory_space<vmem>>, %arg5: memref<64x128xbf16, #tpu.memory_space<vmem>>, %arg6: memref<1x128xf32, #tpu.memory_space<vmem>>, %arg7: memref<32x128xf32, #tpu.memory_space<vmem>>) attributes {dimension_semantics = [], scalar_prefetch = 0 : i64, scratch_operands = 0 : i64, tpu.core_type = #tpu.core_type<tc>} {
    %c0 = arith.constant 0 : index
    %c0_0 = arith.constant 0 : index
    %0 = vector.load %arg0[%c0, %c0_0] : memref<1x64xi32, #tpu.memory_space<vmem>>, vector<1x64xi32>
    %c0_1 = arith.constant 0 : index
    %c0_2 = arith.constant 0 : index
    %1 = vector.load %arg1[%c0_1, %c0_2] : memref<1x64xi32, #tpu.memory_space<vmem>>, vector<1x64xi32>
    %2 = tpu.iota {dimensions = array<i32: 0>} : vector<32x64xi32>
    %3 = vector.broadcast %1 : vector<1x64xi32> to vector<32x64xi32>
    %4 = arith.cmpi eq, %2, %3 : vector<32x64xi32>
    %cst = arith.constant 1.000000e+00 : f32
    %cst_3 = arith.constant 0.000000e+00 : f32
    %5 = vector.broadcast %cst : f32 to vector<32x64xf32>
    %6 = vector.broadcast %cst_3 : f32 to vector<32x64xf32>
    %7 = arith.select %4, %5, %6 : vector<32x64xi1>, vector<32x64xf32>
    %8 = arith.truncf %7 : vector<32x64xf32> to vector<32x64xbf16>
    %9 = vector.broadcast %0 : vector<1x64xi32> to vector<32x64xi32>
    %10 = arith.cmpi eq, %2, %9 : vector<32x64xi32>
    %cst_4 = arith.constant 1.000000e+00 : f32
    %cst_5 = arith.constant 0.000000e+00 : f32
    %11 = vector.broadcast %cst_4 : f32 to vector<32x64xf32>
    %12 = vector.broadcast %cst_5 : f32 to vector<32x64xf32>
    %13 = arith.select %10, %11, %12 : vector<32x64xi1>, vector<32x64xf32>
    %14 = arith.truncf %13 : vector<32x64xf32> to vector<32x64xbf16>
    %cst_6 = arith.constant dense<0.000000e+00> : vector<32x32xf32>
    %15 = tpu.matmul %8, %14, %cst_6 {dimension_numbers = #tpu.dot_dimension_numbers<[1], [1], [0], [0], [0, 0, 1, 0], [], []>} : vector<32x64xbf16>, vector<32x64xbf16>, vector<32x32xf32> -> vector<32x32xf32>
    %16 = arith.truncf %15 : vector<32x32xf32> to vector<32x32xbf16>
    %c0_7 = arith.constant 0 : index
    %c0_8 = arith.constant 0 : index
    %17 = vector.load %arg2[%c0_7, %c0_8] : memref<32x32xbf16, #tpu.memory_space<vmem>>, vector<32x32xbf16>
    %cst_9 = arith.constant dense<0.000000e+00> : vector<32x32xf32>
    %18 = tpu.matmul %16, %17, %cst_9 {dimension_numbers = #tpu.dot_dimension_numbers<[1], [0], [0], [1], [0, 0, 1, 1], [], []>} : vector<32x32xbf16>, vector<32x32xbf16>, vector<32x32xf32> -> vector<32x32xf32>
    %19 = arith.truncf %18 : vector<32x32xf32> to vector<32x32xbf16>
    %20 = tpu.concatenate %19, %17 in 1 : vector<32x32xbf16>, vector<32x32xbf16> -> vector<32x64xbf16>
    %c0_10 = arith.constant 0 : index
    %c0_11 = arith.constant 0 : index
    %21 = vector.load %arg3[%c0_10, %c0_11] : memref<64x32xbf16, #tpu.memory_space<vmem>>, vector<64x32xbf16>
    %cst_12 = arith.constant dense<0.000000e+00> : vector<32x32xf32>
    %22 = tpu.matmul %20, %21, %cst_12 {dimension_numbers = #tpu.dot_dimension_numbers<[1], [0], [0], [1], [0, 0, 1, 1], [], []>} : vector<32x64xbf16>, vector<64x32xbf16>, vector<32x32xf32> -> vector<32x32xf32>
    %c0_13 = arith.constant 0 : index
    %c0_14 = arith.constant 0 : index
    %23 = vector.load %arg4[%c0_13, %c0_14] : memref<1x32xf32, #tpu.memory_space<vmem>>, vector<1x32xf32>
    %24 = vector.broadcast %23 : vector<1x32xf32> to vector<32x32xf32>
    %25 = arith.addf %22, %24 : vector<32x32xf32>
    %cst_15 = arith.constant 0.000000e+00 : f32
    %26 = vector.broadcast %cst_15 : f32 to vector<32x32xf32>
    %27 = arith.maximumf %25, %26 : vector<32x32xf32>
    %28 = arith.truncf %27 : vector<32x32xf32> to vector<32x32xbf16>
    %cst_16 = arith.constant dense<0.000000e+00> : vector<32x32xf32>
    %29 = tpu.matmul %16, %28, %cst_16 {dimension_numbers = #tpu.dot_dimension_numbers<[1], [0], [0], [1], [0, 0, 1, 1], [], []>} : vector<32x32xbf16>, vector<32x32xbf16>, vector<32x32xf32> -> vector<32x32xf32>
    %30 = arith.truncf %29 : vector<32x32xf32> to vector<32x32xbf16>
    %31 = tpu.concatenate %30, %28 in 1 : vector<32x32xbf16>, vector<32x32xbf16> -> vector<32x64xbf16>
    %c0_17 = arith.constant 0 : index
    %c0_18 = arith.constant 0 : index
    %32 = vector.load %arg5[%c0_17, %c0_18] : memref<64x128xbf16, #tpu.memory_space<vmem>>, vector<64x128xbf16>
    %cst_19 = arith.constant dense<0.000000e+00> : vector<32x128xf32>
    %33 = tpu.matmul %31, %32, %cst_19 {dimension_numbers = #tpu.dot_dimension_numbers<[1], [0], [0], [1], [0, 0, 1, 1], [], []>} : vector<32x64xbf16>, vector<64x128xbf16>, vector<32x128xf32> -> vector<32x128xf32>
    %c0_20 = arith.constant 0 : index
    %c0_21 = arith.constant 0 : index
    %34 = vector.load %arg6[%c0_20, %c0_21] : memref<1x128xf32, #tpu.memory_space<vmem>>, vector<1x128xf32>
    %35 = vector.broadcast %34 : vector<1x128xf32> to vector<32x128xf32>
    %36 = arith.addf %33, %35 : vector<32x128xf32>
    %cst_22 = arith.constant 0.000000e+00 : f32
    %37 = vector.broadcast %cst_22 : f32 to vector<32x128xf32>
    %38 = arith.maximumf %36, %37 : vector<32x128xf32>
    %c0_23 = arith.constant 0 : index
    %c0_24 = arith.constant 0 : index
    %39 = vector.load %arg7[%c0_23, %c0_24] : memref<32x128xf32, #tpu.memory_space<vmem>>, vector<32x128xf32>
    tpu.vector_store %arg7[%c0_23, %c0_24], %38 {strides = array<i32>} : memref<32x128xf32, #tpu.memory_space<vmem>>, vector<32x128xf32>,
    return
  }
}

</mosaic_0001>

<bundles_post_ra>
// kernel: squeeze.3
= control target key start
LH: loop header
LB: loop body
LE: loop exit
PB: predicated region body
PF: predicated region fallthrough
CT: control target
= control target key end

     0   :  { %s37_s8 = smov 16   ;;  %s38_s9 = smov 32   ;;  %vm7_vm0 = vcmask 130048   ;;  %vm13_vm1 = vcmask 523648   ;;  %vm19_vm2 = vcmask 392448   ;;  %vm25_vm3 = vcmask 261248   ;;  %s55_s0 = inlined_call_operand.vmem [shape: s32[4,16], index: 0, kind: input, shape index: {}]   ;;  %s56_s1 = inlined_call_operand.vmem [shape: s32[1,64], index: 1, kind: output, shape index: {}]  }
   0x1   :  { %v4_v0 = vld [vmem:[%s55_s0] sm:$0xf]  ;;  %s36_s0 = smov 48  }
   0x2   :  { %5 = vst [vmem:[#allocation1] sm:$0xf] %v4_v0 }
   0x9   :  { %v10_v1 = vld [vmem:[#allocation1 + $0x3] sm:$0x1]   ;;  %v22_v2 = vld [vmem:[#allocation1 + $0x1] sm:$0x1]   ;;  %v16_v3 = vld [vmem:[#allocation1 + $0x2] sm:$0x1]  }
   0xa   :  { %11 = vrot.lane.b32.xlu0 %v10_v1, %s36_s0  ;;  %23 = vrot.lane.b32.xlu1 %v22_v2, %s37_s8  ;;  %v6_v4 = vld [vmem:[#allocation1] sm:$0x1]  }
   0xb   :  { %8 = vst.msk [vmem:[#allocation0] sm:$0x1] %vm7_vm0, %v6_v4  }
  0x12   :  { %17 = vrot.lane.b32.xlu0 %v16_v3, %s38_s9 }
  0x7c   :  { %v12_v5 = vpop.permute.xlu0 %11   ;;  %v24_v6 = vpop.permute.xlu1 %23  }
  0x7d   :  { %14 = vst.msk [vmem:[#allocation0] sm:$0x1] %vm13_vm1, %v12_v5  }
  0x84   :  { %v18_v7 = vpop.permute.xlu0 %17  }
  0x85   :  { %20 = vst.msk [vmem:[#allocation0] sm:$0x1] %vm19_vm2, %v18_v7  }
  0x86   :  { %26 = vst.msk [vmem:[#allocation0] sm:$0x1] %vm25_vm3, %v24_v6  }
  0x8d   :  { %v29_v8 = vld [vmem:[#allocation0] sm:$0x1] }
  0x8e   :  { %32 = vst [vmem:[%s56_s1] sm:$0x1] %v29_v8 }

// kernel: graphgnn_forward_batched.1
= control target key start
LH: loop header
LB: loop body
LE: loop exit
PB: predicated region body
PF: predicated region fallthrough
CT: control target
= control target key end

     0   :  { %v29_v0 = vlaneseq  ;;  %v417_v6 = vmov 0.0   ;;  %vm56_vm4 = vcmask 523264   ;;  %s418_s30 = smov 32   ;;  %vm106_vm9 = vcmask 261120   ;;  %s537_s0 = inlined_call_operand.vmem [shape: s32[1,64], index: 0, kind: input, shape index: {}]   ;;  %s538_s1 = inlined_call_operand.vmem [shape: s32[1,64], index: 1, kind: input, shape index: {}]   ;;  %s539_s2 = inlined_call_operand.vmem [shape: bf16[32,32], index: 2, kind: input, shape index: {}]   ;;  %s540_s4 = inlined_call_operand.vmem [shape: f32[1,32], index: 4, kind: input, shape index: {}]   ;;  %s541_s3 = inlined_call_operand.vmem [shape: bf16[64,32], index: 3, kind: input, shape index: {}]   ;;  %s542_s6 = inlined_call_operand.vmem [shape: f32[1,128], index: 6, kind: input, shape index: {}]   ;;  %s543_s5 = inlined_call_operand.vmem [shape: bf16[64,128], index: 5, kind: input, shape index: {}]   ;;  %s544_s7 = inlined_call_operand.vmem [shape: f32[32,128], index: 7, kind: output, shape index: {}]  }
   0x1   :  { %v413_v2 = vld [vmem:[%s537_s0] ss:$0 sm:$0xff]  ;;  %v400_v22 = vld [vmem:[%s539_s2 + $0x8] sm:$0xff]  ;;  %v404_v30 = vld [vmem:[%s541_s3 + $0x18] sm:$0xff] }
   0x2   :  { %v30_v1 = vshrl.u32 %v29_v0, 7  ;;  %v414_v14 = vld [vmem:[%s538_s1] ss:$0 sm:$0xff]  ;;  %119 = vmatpush.bf16.msra.mxu1 %v400_v22  ;;  %409 = vmatpush.bf16.msra.mxu3 %v400_v22  ;;  %v403_v31 = vld [vmem:[%s541_s3 + $0x10] sm:$0xff]  ;;  %v402_v32 = vld [vmem:[%s541_s3 + $0x8] sm:$0xff] }
   0x3   :  { %v399_v23 = vld [vmem:[%s539_s2] sm:$0xff]  ;;  %200 = vmatpush.bf16.msra.mxu2 %v404_v30 }
   0x4   :  { %v32_v3 = vadd.s32 16, %v30_v1  ;;  %v33_v4 = vadd.s32 24, %v30_v1  ;;  %v31_v5 = vadd.s32 8, %v30_v1  ;;  %vm46_vm2 = vcmp.eq.s32.totalorder %v30_v1, %v413_v2  ;;  %146 = vrot.lane.b32.xlu0 %v399_v23, %s418_s30  ;;  %v401_v33 = vld [vmem:[%s541_s3] sm:$0xff] }
   0x5   :  { %v50_v10 = vsel %vm46_vm2, 1.0, %v417_v6  ;;  %vm35_vm5 = vcmp.eq.s32.totalorder %v30_v1, %v414_v14  ;;  %v415_v52 = vld [vmem:[%s540_s4] ss:$0 sm:$0xff] }
   0x6   :  { %vm48_vm0 = vcmp.eq.s32.totalorder %v32_v3, %v413_v2  ;;  %vm49_vm1 = vcmp.eq.s32.totalorder %v33_v4, %v413_v2  ;;  %vm47_vm3 = vcmp.eq.s32.totalorder %v31_v5, %v413_v2  ;;  %vm36_vm6 = vcmp.eq.s32.totalorder %v31_v5, %v414_v14  ;;  %120 = vmatpush.bf16.msra.mxu1 %v399_v23 }
   0x7   :  { %v52_v7 = vsel %vm48_vm0, 1.0, %v417_v6  ;;  %v53_v8 = vsel %vm49_vm1, 1.0, %v417_v6  ;;  %v51_v11 = vsel %vm47_vm3, 1.0, %v417_v6  ;;  %v39_v16 = vsel %vm35_vm5, 1.0, %v417_v6  ;;  %410 = vmatpush.bf16.msra.mxu3 %v399_v23  ;;  %201 = vmatpush.bf16.msra.mxu2 %v403_v31 }
   0x8   :  { %v55_v9 = vpack.c.bf16 %v53_v8, %v52_v7  ;;  %v54_v13 = vpack.c.bf16 %v51_v11, %v50_v10  ;;  %v40_v17 = vsel %vm36_vm6, 1.0, %v417_v6  ;;  %vm37_vm7 = vcmp.eq.s32.totalorder %v32_v3, %v414_v14  ;;  %v408_v11 = vld [vmem:[%s543_s5 + $0x18] sm:$0xff] }
   0x9   :  { %v43_v18 = vpack.c.bf16 %v40_v17, %v39_v16  ;;  %vm38_vm8 = vcmp.eq.s32.totalorder %v33_v4, %v414_v14  ;;  %v41_v19 = vsel %vm37_vm7, 1.0, %v417_v6  ;;  %v405_v14 = vld [vmem:[%s543_s5] sm:$0xff] }
   0xa   :  { %v67_v12 = vsel %vm56_vm4, %v55_v9, 0  ;;  %v64_v15 = vsel %vm56_vm4, %v54_v13, 0  ;;  %v42_v20 = vsel %vm38_vm8, 1.0, %v417_v6  ;;  %322 = vmatpush.bf16.msrb.mxu1 %v408_v11  ;;  %v406_v13 = vld [vmem:[%s543_s5 + $0x8] sm:$0xff] }
   0xb   :  { %75 = vmatpush.bf16.xpose.msra.mxu0 %v67_v12  ;;  %v44_v21 = vpack.c.bf16 %v42_v20, %v41_v19  ;;  %202 = vmatpush.bf16.msra.mxu2 %v402_v32  ;;  %v407_v12 = vld [vmem:[%s543_s5 + $0x10] sm:$0xff] }
   0xc   :  { %148 = vrot.lane.b32.xlu0 %v400_v22, %s418_s30 }
   0xe   :  { %323 = vmatpush.bf16.msrb.mxu1 %v407_v12 }
   0xf   :  { %203 = vmatpush.bf16.msra.mxu2 %v401_v33  ;;  %v416_v33 = vld [vmem:[%s542_s6] ss:$0 sm:$0xff] }
  0x12   :  { %324 = vmatpush.bf16.msrb.mxu1 %v406_v13 }
  0x13   :  { %76 = vmatpush.bf16.xpose.msra.mxu0 %v64_v15 }
  0x16   :  { %325 = vmatpush.bf16.msrb.mxu1 %v405_v14 }
  0x1a   :  { %349 = vmatmul.msk.bf16.vlgmr.msra.gmra.mxu0 %vm56_vm4, %v43_v18 }
  0x2a   :  { %350 = vmatmul.msk.bf16.gmra.mxu0 %vm56_vm4, %v44_v21 }
  0x76   :  { %v147_v40 = vpop.permute.xlu0 %146 }
  0x7e   :  { %v149_v49 = vpop.permute.xlu0 %148 }
  0x97   :  { %v78_v24 = vpop.f32.mrf.mxu0 }
  0x9f   :  { %v80_v25 = vpop.f32.mrf.mxu0 }
  0xa0   :  { %v477_v26 = vpack.c.bf16 %v80_v25, %v78_v24 }
  0xa2   :  { %359 = vmatmul.msk.bf16.vlgmr.msra.gmra.mxu1 %vm106_vm9, %v477_v26 }
  0xa7   :  { %v83_v27 = vpop.f32.mrf.mxu0 }
  0xaf   :  { %v85_v28 = vpop.f32.mrf.mxu0 }
  0xb0   :  { %v89_v29 = vpack.c.bf16 %v85_v28, %v83_v27 }
  0xb2   :  { %360 = vmatmul.msk.bf16.vlgmr.msra.gmra.mxu3 %vm106_vm9, %v89_v29 }
 0x11f   :  { %v122_v34 = vpop.f32.mrf.mxu1 }
 0x120   :  { %v132_v35 = vpack.c.bf16 %v122_v34, %v122_v34 }
 0x122   :  { %v140_v38 = vunpack.c.l.b16 %v132_v35 }
 0x127   :  { %v124_v36 = vpop.f32.mrf.mxu1 }
 0x128   :  { %v133_v37 = vpack.c.bf16 %v124_v36, %v124_v36 }
 0x12a   :  { %v141_v39 = vunpack.c.l.b16 %v133_v37 }
 0x12c   :  { %v144_v41 = vpack.c.b16 %v141_v39, %v140_v38 }
 0x12e   :  { %v152_v42 = vsel %vm106_vm9, %v144_v41, %v147_v40 }
 0x12f   :  { %377 = vmatmul.msk.bf16.vlgmr.msra.gmra.mxu2 %vm56_vm4, %v152_v42 }
 0x135   :  { %v127_v43 = vpop.f32.mrf.mxu3 }
 0x136   :  { %v134_v44 = vpack.c.bf16 %v127_v43, %v127_v43 }
 0x138   :  { %v142_v47 = vunpack.c.l.b16 %v134_v44 }
 0x13d   :  { %v129_v45 = vpop.f32.mrf.mxu3 }
 0x13e   :  { %v135_v46 = vpack.c.bf16 %v129_v45, %v129_v45 }
 0x140   :  { %v143_v48 = vunpack.c.l.b16 %v135_v46 }
 0x142   :  { %v145_v50 = vpack.c.b16 %v143_v48, %v142_v47 }
 0x144   :  { %v155_v51 = vsel %vm106_vm9, %v145_v50, %v149_v49 }
 0x145   :  { %378 = vmatmul.msk.bf16.gmra.mxu2 %vm56_vm4, %v155_v51 }
 0x1b2   :  { %v205_v53 = vpop.f32.mrf.mxu2 }
 0x1b3   :  { %v206_v54 = vadd.f32 %v415_v52, %v205_v53 }
 0x1b5   :  { %v215_v55 = vmax.f32 %v206_v54, 0.0 }
 0x1b7   :  { %v219_v58 = vpack.c.bf16 %v215_v55, %v215_v55 }
 0x1b9   :  { %v227_v61 = vunpack.c.l.b16 %v219_v58 }
 0x1ba   :  { %v207_v56 = vpop.f32.mrf.mxu2 }
 0x1bb   :  { %v208_v57 = vadd.f32 %v415_v52, %v207_v56 }
 0x1bd   :  { %v216_v59 = vmax.f32 %v208_v57, 0.0 }
 0x1bf   :  { %v220_v60 = vpack.c.bf16 %v216_v59, %v216_v59 }
 0x1c1   :  { %v228_v62 = vunpack.c.l.b16 %v220_v60 }
 0x1c3   :  { %v231_v63 = vpack.c.b16 %v228_v62, %v227_v61 }
 0x1c5   :  { %268 = vrot.lane.b32.xlu1 %v231_v63, %s418_s30 }
 0x1c8   :  { %v210_v0 = vpop.f32.mrf.mxu2 }
 0x1c9   :  { %v211_v1 = vadd.f32 %v415_v52, %v210_v0 }
 0x1cb   :  { %v217_v2 = vmax.f32 %v211_v1, 0.0 }
 0x1cd   :  { %v221_v5 = vpack.c.bf16 %v217_v2, %v217_v2 }
 0x1cf   :  { %v229_v8 = vunpack.c.l.b16 %v221_v5 }
 0x1d0   :  { %v212_v3 = vpop.f32.mrf.mxu2 }
 0x1d1   :  { %v213_v4 = vadd.f32 %v415_v52, %v212_v3 }
 0x1d3   :  { %v218_v6 = vmax.f32 %v213_v4, 0.0 }
 0x1d5   :  { %v222_v7 = vpack.c.bf16 %v218_v6, %v218_v6 }
 0x1d7   :  { %v230_v9 = vunpack.c.l.b16 %v222_v7 }
 0x1d9   :  { %v232_v10 = vpack.c.b16 %v230_v9, %v229_v8 }
 0x1db   :  { %270 = vrot.lane.b32.xlu1 %v232_v10, %s418_s30  ;;  %241 = vmatpush.bf16.msrb.mxu3 %v232_v10 }
 0x1df   :  { %242 = vmatpush.bf16.msrb.mxu3 %v231_v63 }
 0x1e2   :  { %379 = vmatmul.msk.bf16.vlgmr.msrb.gmra.mxu3 %vm106_vm9, %v477_v26 }
 0x1f2   :  { %380 = vmatmul.msk.bf16.gmra.mxu3 %vm106_vm9, %v89_v29 }
 0x237   :  { %v269_v22 = vpop.permute.xlu1 %268 }
 0x24d   :  { %v271_v31 = vpop.permute.xlu1 %270 }
 0x265   :  { %v244_v15 = vpop.f32.mrf.mxu3 }
 0x266   :  { %v254_v16 = vpack.c.bf16 %v244_v15, %v244_v15 }
 0x268   :  { %v262_v19 = vunpack.c.l.b16 %v254_v16 }
 0x26d   :  { %v246_v17 = vpop.f32.mrf.mxu3 }
 0x26e   :  { %v255_v18 = vpack.c.bf16 %v246_v17, %v246_v17 }
 0x270   :  { %v263_v20 = vunpack.c.l.b16 %v255_v18 }
 0x272   :  { %v266_v21 = vpack.c.b16 %v263_v20, %v262_v19 }
 0x274   :  { %v274_v23 = vsel %vm106_vm9, %v266_v21, %v269_v22 }
 0x275   :  { %v249_v24 = vpop.f32.mrf.mxu3  ;;  %397 = vmatmul.msk.bf16.vlgmr.msrb.gmra.mxu1 %vm56_vm4, %v274_v23 }
 0x276   :  { %v256_v25 = vpack.c.bf16 %v249_v24, %v249_v24 }
 0x278   :  { %v264_v28 = vunpack.c.l.b16 %v256_v25 }
 0x27d   :  { %v251_v26 = vpop.f32.mrf.mxu3 }
 0x27e   :  { %v257_v27 = vpack.c.bf16 %v251_v26, %v251_v26 }
 0x280   :  { %v265_v29 = vunpack.c.l.b16 %v257_v27 }
 0x282   :  { %v267_v30 = vpack.c.b16 %v265_v29, %v264_v28 }
 0x284   :  { %v277_v32 = vsel %vm106_vm9, %v267_v30, %v271_v31 }
 0x285   :  { %398 = vmatmul.msk.bf16.gmra.mxu1 %vm56_vm4, %v277_v32 }
 0x2f2   :  { %v327_v34 = vpop.f32.mrf.mxu1 }
 0x2f3   :  { %v328_v35 = vadd.f32 %v416_v33, %v327_v34 }
 0x2f5   :  { %v337_v36 = vmax.f32 %v328_v35, 0.0 }
 0x2f7   :  { %341 = vst [vmem:[%s544_s7] sm:$0xff] %v337_v36 }
 0x2fa   :  { %v329_v37 = vpop.f32.mrf.mxu1 }
 0x2fb   :  { %v330_v38 = vadd.f32 %v416_v33, %v329_v37 }
 0x2fd   :  { %v338_v39 = vmax.f32 %v330_v38, 0.0 }
 0x2ff   :  { %342 = vst [vmem:[%s544_s7 + $0x8] sm:$0xff] %v338_v39 }
 0x302   :  { %v332_v40 = vpop.f32.mrf.mxu1 }
 0x303   :  { %v333_v41 = vadd.f32 %v416_v33, %v332_v40 }
 0x305   :  { %v339_v42 = vmax.f32 %v333_v41, 0.0 }
 0x307   :  { %343 = vst [vmem:[%s544_s7 + $0x10] sm:$0xff] %v339_v42 }
 0x30a   :  { %v334_v43 = vpop.f32.mrf.mxu1 }
 0x30b   :  { %v335_v44 = vadd.f32 %v416_v33, %v334_v43 }
 0x30d   :  { %v340_v45 = vmax.f32 %v335_v44, 0.0 }
 0x30f   :  { %344 = vst [vmem:[%s544_s7 + $0x18] sm:$0xff] %v340_v45 }

</bundles_post_ra>
